<compile_context>
chip_gen: v6e
topology: v6e:2x2x1
jax: 0.10.0
libtpu: 0.0.40
codegen_flags: <defaults>
</compile_context>

<pallas_src>
import numpy as np
import jax
import jax.numpy as jnp
from jax import lax
from jax.experimental import pallas as pl
from jax.experimental.pallas import tpu as pltpu


# ---------------------------------------------------------------------------
# Static bilinear-interpolation matrices (PyTorch scale_factor=2, align_corners=False)
# ---------------------------------------------------------------------------
def _bilinear_matrix(n_in: int) -> np.ndarray:
    """(2*n_in, n_in) matrix; entries are exact multiples of 0.25."""
    n_out = 2 * n_in
    m = np.zeros((n_out, n_in), dtype=np.float64)
    for t in range(n_out):
        src = (t + 0.5) / 2.0 - 0.5
        src = max(src, 0.0)
        i0 = int(np.floor(src))
        frac = src - i0
        i0c = min(i0, n_in - 1)
        i1c = min(i0 + 1, n_in - 1)
        m[t, i0c] += 1.0 - frac
        m[t, i1c] += frac
    return m


def _shift_rows(m: np.ndarray, shift: int) -> np.ndarray:
    """s[y] = m[y + shift]; out-of-range rows are zero (encodes the conv zero padding)."""
    s = np.zeros_like(m)
    if shift == 0:
        s[:] = m
    elif shift < 0:
        s[-shift:] = m[:shift]
    else:
        s[:-shift] = m[shift:]
    return s


# ---------------------------------------------------------------------------
# Weight folding (run once per weight update / input resolution, NOT per forward)
# ---------------------------------------------------------------------------
def fold_upsample_conv_weights(conv_w, H: int, W: int):
    """Fold conv weights + height interpolation (+ ky tap shifts) into the constants
    consumed by the kernel.

    NOTE(scaling): Q is dense (3*Co*Ho, C*H) = O(C^2 * H^2) storage/FLOPs.  For small
    spatial sizes this is the right trade (it keeps everything on the MXU); for large
    H*C, factor the height interp back out into its own (exact-bf16) matmul so the
    resident constant stays O(C^2 + H*Ho) and fits v7x's 64 MiB VMEM.
    """
    Co, C = conv_w.shape[0], conv_w.shape[1]
    Ho, Wo = 2 * H, 2 * W

    uh = _bilinear_matrix(H)                                            # (Ho, H)
    uw = _bilinear_matrix(W)                                            # (Wo, W)
    uhs = np.stack([_shift_rows(uh, ky - 1) for ky in range(3)], 0)     # (3, Ho, H)
    uws = np.stack([_shift_rows(uw, kx - 1) for kx in range(3)], 0)     # (3, Wo, W)

    # Q[kx, o*Ho + t, c*H + h] = sum_ky w[o, c, ky, kx] * UHshift[ky][t, h]
    w64 = np.asarray(conv_w, dtype=np.float64)
    q = np.einsum('ocyk,yth->kotch', w64, uhs).reshape(3 * Co * Ho, C * H)
    q = jnp.asarray(q.astype(np.float32))

    # Compensated bf16 split of Q (hi + lo == Q to ~2^-18 relative):
    # lets the dominant matmul run as bf16 MXU passes instead of f32 emulation.
    q_hi = q.astype(jnp.bfloat16)
    q_lo = (q - q_hi.astype(jnp.float32)).astype(jnp.bfloat16)

    # Width-interp matrices, transposed and stacked over kx: (3*W, Wo).
    # Entries are multiples of 0.25 -> exactly representable in bf16.
    uwt = jnp.asarray(uws.transpose(0, 2, 1).reshape(3 * W, Wo).astype(np.float32))
    uwt = uwt.astype(jnp.bfloat16)
    return q_hi, q_lo, uwt


# ---------------------------------------------------------------------------
# Pallas kernel
# ---------------------------------------------------------------------------
def _upsample_conv_kernel(x_ref, qhi_ref, qlo_ref, uwt_ref, o_ref):
    # x_ref:   (B, C*H, W)      f32   images, channels folded into the sublane axis
    # qhi/qlo: (3*Co*Ho, C*H)   bf16  conv weights x height interp, one row block per ky tap
    # uwt_ref: (3*W, Wo)        bf16  width-interp^T, one row block per kx tap
    # o_ref:   (B, Co*Ho, Wo)   f32   output (Co folded into the sublane axis)
    B = x_ref.shape[0]
    W = x_ref.shape[2]
    CoHo = o_ref.shape[1]
    f32 = jnp.float32

    q_hi = qhi_ref[...]
    q_lo = qlo_ref[...]

    for b in range(B):                                  # static unroll; B is small
        x = x_ref[b]                                    # (C*H, W) f32
        x_hi = x.astype(jnp.bfloat16)
        x_lo = (x - x_hi.astype(f32)).astype(jnp.bfloat16)

        # Stage 1 (dominant): channel mix + height interp for all three ky taps in ONE
        # MXU matmul, contraction over C*H.  The expensive C contraction runs before the
        # width doubling (reassociation -> ~2x fewer FLOPs).  bf16x3 compensated product.
        z = jnp.dot(q_hi, x_hi, preferred_element_type=f32)
        z = z + jnp.dot(q_hi, x_lo, preferred_element_type=f32)
        z = z + jnp.dot(q_lo, x_hi, preferred_element_type=f32)        # (3*Co*Ho, W)

        # Stage 2: width interpolation (W -> Wo) per conv tap column kx.
        # UW^T is exact in bf16; Z is carried as a hi/lo split.
        z_hi = z.astype(jnp.bfloat16)
        z_lo = (z - z_hi.astype(f32)).astype(jnp.bfloat16)
        acc = None
        for kx in range(3):
            r0, r1 = kx * CoHo, (kx + 1) * CoHo
            u = uwt_ref[kx * W:(kx + 1) * W, :]                        # (W, Wo) bf16
            part = (jnp.dot(z_hi[r0:r1, :], u, preferred_element_type=f32)
                    + jnp.dot(z_lo[r0:r1, :], u, preferred_element_type=f32))
            acc = part if acc is None else acc + part

        o_ref[b] = acc.astype(o_ref.dtype)


# ---------------------------------------------------------------------------
# Wrapper
# ---------------------------------------------------------------------------
def _pick_batch_block(n: int) -> int:
    """Largest divisor of n that still leaves >= 2 grid steps (feeds both v7x TCs via the
    'parallel' axis); on v5e/v6e the grid is a serial loop and a larger per-step batch
    simply amortizes the ~0.35us/step overhead."""
    if n <= 1:
        return max(n, 1)
    for b in range(n // 2, 0, -1):
        if n % b == 0:
            return b
    return 1


def upsample_forward(x, folded, *, vmem_limit_bytes=None):
    """x: (N, C, H, W) f32; folded = fold_upsample_conv_weights(conv_w, H, W)
    -> (N, C//2, 2H, 2W)."""
    q_hi, q_lo, uwt = folded
    N, C, H, W = x.shape
    Ho, Wo = 2 * H, 2 * W
    CoHo = q_hi.shape[0] // 3
    Co = CoHo // Ho
    assert q_hi.shape == (3 * Co * Ho, C * H) and uwt.shape == (3 * W, Wo)

    # NCHW -> (N, C*H, W) and (N, Co*Ho, Wo) -> (N, Co, Ho, Wo) are contiguous reshapes:
    # no standalone XLA transpose (no extra HBM pass) on either side.
    x_l = x.reshape(N, C * H, W)

    B = _pick_batch_block(N)

    cp_kwargs = dict(dimension_semantics=("parallel",))
    if vmem_limit_bytes is not None:
        # e.g. raise above the 16/32 MiB scoped defaults on v5e/v6e; keep < 64 MiB on v7x.
        cp_kwargs["vmem_limit_bytes"] = int(vmem_limit_bytes)

    out_l = pl.pallas_call(
        _upsample_conv_kernel,
        out_shape=jax.ShapeDtypeStruct((N, Co * Ho, Wo), x.dtype),
        grid=(N // B,),
        in_specs=[
            pl.BlockSpec((B, C * H, W), lambda n: (n, 0, 0)),
            # Constant-index operands: DMA'd once, VMEM-resident across all grid steps.
            # For production channel counts, tile these along C*H / output rows (and
            # single-buffer them) to stay inside v7x's 64 MiB VMEM.
            pl.BlockSpec((3 * CoHo, C * H), lambda n: (0, 0)),
            pl.BlockSpec((3 * CoHo, C * H), lambda n: (0, 0)),
            pl.BlockSpec((3 * W, Wo), lambda n: (0, 0)),
        ],
        out_specs=pl.BlockSpec((B, CoHo, Wo), lambda n: (n, 0, 0)),
        compiler_params=pltpu.CompilerParams(**cp_kwargs),
    )(x_l, q_hi, q_lo, uwt)

    return out_l.reshape(N, Co, Ho, Wo)


# ---------------------------------------------------------------------------
# Pure-JAX reference (independent of the folding): bilinear matrices + real conv
# ---------------------------------------------------------------------------
def _reference(x, conv_w):
    _, _, H, W = x.shape
    uh = jnp.asarray(_bilinear_matrix(H).astype(np.float32))
    uw = jnp.asarray(_bilinear_matrix(W).astype(np.float32))
    up = jnp.einsum('th,nchw,sw->ncts', uh, x, uw, precision=lax.Precision.HIGHEST)
    return lax.conv_general_dilated(
        up, conv_w, window_strides=(1, 1), padding=((1, 1), (1, 1)),
        dimension_numbers=('NCHW', 'OIHW', 'NCHW'),
        precision=lax.Precision.HIGHEST)


if __name__ == "__main__":
    N, n_feat, H, W = 2, 4, 16, 16
    key = jax.random.PRNGKey(0)
    k1, k2 = jax.random.split(key)
    x = jax.random.normal(k1, (N, n_feat, H, W), dtype=jnp.float32)
    conv_w = 0.1 * jax.random.normal(k2, (n_feat // 2, n_feat, 3, 3), dtype=jnp.float32)

    # Constants depend only on the weights + resolution: built once, off the hot path.
    folded = fold_upsample_conv_weights(conv_w, H, W)

    out = jax.block_until_ready(upsample_forward(x, folded))
    ref = jax.block_until_ready(_reference(x, conv_w))

    assert out.shape == (N, n_feat // 2, 2 * H, 2 * W), out.shape
    # rtol unchanged (1e-4); atol widened 1e-5 -> 5e-5 to cover the ~2^-17 * |intermediate|
    # absolute error of the compensated-bf16 (bf16x3) MXU path requested by the perf review.
    np.testing.assert_allclose(np.asarray(out), np.asarray(ref), rtol=1e-4, atol=5e-5)
    print("KERNEL_OK")
</pallas_src>

<mosaic_0001>
module attributes {stable_mosaic.version = 11 : i64} {
  func.func @_upsample_conv_kernel(%arg0: i32, %arg1: memref<1x64x16xf32, #tpu.memory_space<vmem>>, %arg2: memref<192x64xbf16, #tpu.memory_space<vmem>>, %arg3: memref<192x64xbf16, #tpu.memory_space<vmem>>, %arg4: memref<48x32xbf16, #tpu.memory_space<vmem>>, %arg5: memref<1x64x32xf32, #tpu.memory_space<vmem>>) attributes {dimension_semantics = [#tpu.dimension_semantics<parallel>], iteration_bounds = array<i64: 2>, scalar_prefetch = 0 : i64, scratch_operands = 0 : i64, tpu.core_type = #tpu.core_type<tc>, window_params = [{transform_indices = @transform_0, window_bounds = array<i64: 1, 64, 16>}, {pipeline_mode = #tpu.pipeline_mode<synchronous>, transform_indices = @transform_1, window_bounds = array<i64: 192, 64>}, {pipeline_mode = #tpu.pipeline_mode<synchronous>, transform_indices = @transform_2, window_bounds = array<i64: 192, 64>}, {pipeline_mode = #tpu.pipeline_mode<synchronous>, transform_indices = @transform_3, window_bounds = array<i64: 48, 32>}, {transform_indices = @transform_4, window_bounds = array<i64: 1, 64, 32>}]} {
    %c0 = arith.constant 0 : index
    %c0_0 = arith.constant 0 : index
    %0 = vector.load %arg2[%c0, %c0_0] : memref<192x64xbf16, #tpu.memory_space<vmem>>, vector<192x64xbf16>
    %c0_1 = arith.constant 0 : index
    %c0_2 = arith.constant 0 : index
    %1 = vector.load %arg3[%c0_1, %c0_2] : memref<192x64xbf16, #tpu.memory_space<vmem>>, vector<192x64xbf16>
    %c0_3 = arith.constant 0 : index
    %c0_4 = arith.constant 0 : index
    %c0_5 = arith.constant 0 : index
    %2 = vector.load %arg1[%c0_3, %c0_4, %c0_5] : memref<1x64x16xf32, #tpu.memory_space<vmem>>, vector<1x64x16xf32>
    %3 = vector.shape_cast %2 : vector<1x64x16xf32> to vector<64x16xf32>
    %4 = arith.truncf %3 : vector<64x16xf32> to vector<64x16xbf16>
    %5 = arith.extf %4 : vector<64x16xbf16> to vector<64x16xf32>
    %6 = arith.subf %3, %5 : vector<64x16xf32>
    %7 = arith.truncf %6 : vector<64x16xf32> to vector<64x16xbf16>
    %cst = arith.constant dense<0.000000e+00> : vector<192x16xf32>
    %8 = tpu.matmul %0, %4, %cst {dimension_numbers = #tpu.dot_dimension_numbers<[1], [0], [0], [1], [0, 0, 1, 1], [], []>} : vector<192x64xbf16>, vector<64x16xbf16>, vector<192x16xf32> -> vector<192x16xf32>
    %cst_6 = arith.constant dense<0.000000e+00> : vector<192x16xf32>
    %9 = tpu.matmul %0, %7, %cst_6 {dimension_numbers = #tpu.dot_dimension_numbers<[1], [0], [0], [1], [0, 0, 1, 1], [], []>} : vector<192x64xbf16>, vector<64x16xbf16>, vector<192x16xf32> -> vector<192x16xf32>
    %10 = arith.addf %8, %9 : vector<192x16xf32>
    %cst_7 = arith.constant dense<0.000000e+00> : vector<192x16xf32>
    %11 = tpu.matmul %1, %4, %cst_7 {dimension_numbers = #tpu.dot_dimension_numbers<[1], [0], [0], [1], [0, 0, 1, 1], [], []>} : vector<192x64xbf16>, vector<64x16xbf16>, vector<192x16xf32> -> vector<192x16xf32>
    %12 = arith.addf %10, %11 : vector<192x16xf32>
    %13 = arith.truncf %12 : vector<192x16xf32> to vector<192x16xbf16>
    %14 = arith.extf %13 : vector<192x16xbf16> to vector<192x16xf32>
    %15 = arith.subf %12, %14 : vector<192x16xf32>
    %16 = arith.truncf %15 : vector<192x16xf32> to vector<192x16xbf16>
    %c0_8 = arith.constant 0 : index
    %c0_9 = arith.constant 0 : index
    %17 = vector.load %arg4[%c0_8, %c0_9] : memref<48x32xbf16, #tpu.memory_space<vmem>>, vector<16x32xbf16>
    %18 = vector.extract_strided_slice %13 {offsets = [0, 0], sizes = [64, 16], strides = [1, 1]} : vector<192x16xbf16> to vector<64x16xbf16>
    %cst_10 = arith.constant dense<0.000000e+00> : vector<64x32xf32>
    %19 = tpu.matmul %18, %17, %cst_10 {dimension_numbers = #tpu.dot_dimension_numbers<[1], [0], [0], [1], [0, 0, 1, 1], [], []>} : vector<64x16xbf16>, vector<16x32xbf16>, vector<64x32xf32> -> vector<64x32xf32>
    %20 = vector.extract_strided_slice %16 {offsets = [0, 0], sizes = [64, 16], strides = [1, 1]} : vector<192x16xbf16> to vector<64x16xbf16>
    %cst_11 = arith.constant dense<0.000000e+00> : vector<64x32xf32>
    %21 = tpu.matmul %20, %17, %cst_11 {dimension_numbers = #tpu.dot_dimension_numbers<[1], [0], [0], [1], [0, 0, 1, 1], [], []>} : vector<64x16xbf16>, vector<16x32xbf16>, vector<64x32xf32> -> vector<64x32xf32>
    %22 = arith.addf %19, %21 : vector<64x32xf32>
    %c16 = arith.constant 16 : index
    %c0_12 = arith.constant 0 : index
    %23 = vector.load %arg4[%c16, %c0_12] : memref<48x32xbf16, #tpu.memory_space<vmem>>, vector<16x32xbf16>
    %24 = vector.extract_strided_slice %13 {offsets = [64, 0], sizes = [64, 16], strides = [1, 1]} : vector<192x16xbf16> to vector<64x16xbf16>
    %cst_13 = arith.constant dense<0.000000e+00> : vector<64x32xf32>
    %25 = tpu.matmul %24, %23, %cst_13 {dimension_numbers = #tpu.dot_dimension_numbers<[1], [0], [0], [1], [0, 0, 1, 1], [], []>} : vector<64x16xbf16>, vector<16x32xbf16>, vector<64x32xf32> -> vector<64x32xf32>
    %26 = vector.extract_strided_slice %16 {offsets = [64, 0], sizes = [64, 16], strides = [1, 1]} : vector<192x16xbf16> to vector<64x16xbf16>
    %cst_14 = arith.constant dense<0.000000e+00> : vector<64x32xf32>
    %27 = tpu.matmul %26, %23, %cst_14 {dimension_numbers = #tpu.dot_dimension_numbers<[1], [0], [0], [1], [0, 0, 1, 1], [], []>} : vector<64x16xbf16>, vector<16x32xbf16>, vector<64x32xf32> -> vector<64x32xf32>
    %28 = arith.addf %25, %27 : vector<64x32xf32>
    %29 = arith.addf %22, %28 : vector<64x32xf32>
    %c32 = arith.constant 32 : index
    %c0_15 = arith.constant 0 : index
    %30 = vector.load %arg4[%c32, %c0_15] : memref<48x32xbf16, #tpu.memory_space<vmem>>, vector<16x32xbf16>
    %31 = vector.extract_strided_slice %13 {offsets = [128, 0], sizes = [64, 16], strides = [1, 1]} : vector<192x16xbf16> to vector<64x16xbf16>
    %cst_16 = arith.constant dense<0.000000e+00> : vector<64x32xf32>
    %32 = tpu.matmul %31, %30, %cst_16 {dimension_numbers = #tpu.dot_dimension_numbers<[1], [0], [0], [1], [0, 0, 1, 1], [], []>} : vector<64x16xbf16>, vector<16x32xbf16>, vector<64x32xf32> -> vector<64x32xf32>
    %33 = vector.extract_strided_slice %16 {offsets = [128, 0], sizes = [64, 16], strides = [1, 1]} : vector<192x16xbf16> to vector<64x16xbf16>
    %cst_17 = arith.constant dense<0.000000e+00> : vector<64x32xf32>
    %34 = tpu.matmul %33, %30, %cst_17 {dimension_numbers = #tpu.dot_dimension_numbers<[1], [0], [0], [1], [0, 0, 1, 1], [], []>} : vector<64x16xbf16>, vector<16x32xbf16>, vector<64x32xf32> -> vector<64x32xf32>
    %35 = arith.addf %32, %34 : vector<64x32xf32>
    %36 = arith.addf %29, %35 : vector<64x32xf32>
    %c0_18 = arith.constant 0 : index
    %c0_19 = arith.constant 0 : index
    %c0_20 = arith.constant 0 : index
    %37 = vector.load %arg5[%c0_18, %c0_19, %c0_20] : memref<1x64x32xf32, #tpu.memory_space<vmem>>, vector<1x64x32xf32>
    %38 = vector.shape_cast %37 : vector<1x64x32xf32> to vector<64x32xf32>
    %39 = vector.shape_cast %36 : vector<64x32xf32> to vector<1x64x32xf32>
    tpu.vector_store %arg5[%c0_18, %c0_19, %c0_20], %39 {strides = array<i32>} : memref<1x64x32xf32, #tpu.memory_space<vmem>>, vector<1x64x32xf32>,
    return
  }
  func.func @transform_0(%arg0: i32) -> (i32, i32, i32) {
    %c0_i32 = arith.constant 0 : i32
    %c0_i32_0 = arith.constant 0 : i32
    %c0_i32_1 = arith.constant 0 : i32
    return %arg0, %c0_i32, %c0_i32_0 : i32, i32, i32
  }
  func.func @transform_1(%arg0: i32) -> (i32, i32) {
    %c0_i32 = arith.constant 0 : i32
    %c0_i32_0 = arith.constant 0 : i32
    %c0_i32_1 = arith.constant 0 : i32
    return %c0_i32, %c0_i32_0 : i32, i32
  }
  func.func @transform_2(%arg0: i32) -> (i32, i32) {
    %c0_i32 = arith.constant 0 : i32
    %c0_i32_0 = arith.constant 0 : i32
    %c0_i32_1 = arith.constant 0 : i32
    return %c0_i32, %c0_i32_0 : i32, i32
  }
  func.func @transform_3(%arg0: i32) -> (i32, i32) {
    %c0_i32 = arith.constant 0 : i32
    %c0_i32_0 = arith.constant 0 : i32
    %c0_i32_1 = arith.constant 0 : i32
    return %c0_i32, %c0_i32_0 : i32, i32
  }
  func.func @transform_4(%arg0: i32) -> (i32, i32, i32) {
    %c0_i32 = arith.constant 0 : i32
    %c0_i32_0 = arith.constant 0 : i32
    %c0_i32_1 = arith.constant 0 : i32
    return %arg0, %c0_i32, %c0_i32_0 : i32, i32, i32
  }
}

</mosaic_0001>

<bundles_post_ra>
// kernel: tpu_custom_call.1
= control target key start
LH: loop header
LB: loop body
LE: loop exit
PB: predicated region body
PF: predicated region fallthrough
CT: control target
= control target key end

     0   :  { %s1932_s15 = smov 0   ;;  %s2280_s0 = inlined_call_operand.vmem [shape: f32[2,64,16], index: 0, kind: input, shape index: {}]   ;;  %s2281_s1 = inlined_call_operand.vmem [shape: bf16[192,64], index: 1, kind: input, shape index: {}]   ;;  %s2282_s2 = inlined_call_operand.vmem [shape: bf16[192,64], index: 2, kind: input, shape index: {}]   ;;  %s2283_s3 = inlined_call_operand.vmem [shape: bf16[48,32], index: 3, kind: input, shape index: {}]   ;;  %s2284_s4 = inlined_call_operand.vmem [shape: f32[2,64,32], index: 4, kind: output, shape index: {}]  }
   0x1 LB: > { %s1522_s16 = sadd.s32 4294967295, %s1905_s15   ;;  %p1526_p0 = scmp.ge.s32.totalorder %s1905_s15, 1  ;;  %s1905_s15 = sphi %s1932_s15, %s14_s15  }
   0x2   : > { %p162_p1 = scmp.lt.s32.totalorder %s1905_s15, 3 }
   0x4   : > { %p163_p2 = pnand %p1526_p0, %p162_p1 }
   0x6   : > { %166 = sbr.rel (%p163_p2) target bundleno = 559 (0x22f), region = 36 }
   0xb   : > { %p188_p3 = scmp.lt.s32.totalorder %s1522_s16, 1  ;;  %v1872_v0 = vld [vmem:[%s2281_s1] sm:$0xff]   ;;  %vm339_vm0 = vcmask 523264   ;;  %v1873_v32 = vld [vmem:[%s2281_s1 + $0x8] sm:$0xff]   ;;  %v1874_v34 = vld [vmem:[%s2281_s1 + $0x10] sm:$0xff]   ;;  %vm963_vm1 = vcmask 130048  }
   0xc   : > { %1740 = vmatprep.mubr.msk.bf16.mxu1 %vm339_vm0, %v1872_v0  ;;  %1708 = vmatprep.mubr.msk.bf16.mxu0 %vm339_vm0, %v1872_v0  ;;  %v1875_v35 = vld [vmem:[%s2281_s1 + $0x18] sm:$0xff]   ;;  %v1876_v36 = vld [vmem:[%s2281_s1 + $0x20] sm:$0xff]   ;;  %v1877_v37 = vld [vmem:[%s2281_s1 + $0x28] sm:$0xff]   ;;  %vm1458_vm2 = vcmask 261120  }
   0xd   : > { %s2294_s16 = smov (!%p188_p3, %s1522_s16), 1  ;;  %v1878_v38 = vld [vmem:[%s2281_s1 + $0x30] sm:$0xff]   ;;  %v1879_v39 = vld [vmem:[%s2281_s1 + $0x38] sm:$0xff]   ;;  %v1880_v40 = vld [vmem:[%s2281_s1 + $0x40] sm:$0xff]  }
   0xe   : > { %s1620_s19 = sshll.u32 %s2294_s16, 6  ;;  %v1881_v41 = vld [vmem:[%s2281_s1 + $0x48] sm:$0xff]   ;;  %v1882_v42 = vld [vmem:[%s2281_s1 + $0x50] sm:$0xff]   ;;  %v1883_v43 = vld [vmem:[%s2281_s1 + $0x58] sm:$0xff]  }
   0xf   : > { %s192_s22 = scalar_lea.vmem %s2280_s0, %s1620_s19  ;;  %v1884_v44 = vld [vmem:[%s2282_s2 + $0x50] sm:$0xff]   ;;  %v1886_v45 = vld [vmem:[%s2282_s2] sm:$0xff]   ;;  %v1885_v46 = vld [vmem:[%s2282_s2 + $0x58] sm:$0xff]   ;;  %s2256_s5 = scalar_lea.vmem %s2284_s4, %s1620_s19 }
  0x10   : > { %v253_v1 = vld [vmem:[%s192_s22 + $0x30] sm:$0xff]  ;;  %v254_v2 = vld [vmem:[%s192_s22 + $0x38] sm:$0xff]  ;;  %v251_v3 = vld [vmem:[%s192_s22 + $0x20] sm:$0xff] }
  0x11   : > { %v258_v4 = vpack.c.bf16 %v254_v2, %v253_v1  ;;  %v252_v5 = vld [vmem:[%s192_s22 + $0x28] sm:$0xff]  ;;  %v249_v6 = vld [vmem:[%s192_s22 + $0x10] sm:$0xff]  ;;  %v250_v7 = vld [vmem:[%s192_s22 + $0x18] sm:$0xff] }
  0x12   : > { %v257_v8 = vpack.c.bf16 %v252_v5, %v251_v3  ;;  %v1953_v9 = vpack.c.bf16 %v250_v7, %v249_v6  ;;  %v247_v10 = vld [vmem:[%s192_s22] sm:$0xff]  ;;  %v248_v11 = vld [vmem:[%s192_s22 + $0x8] sm:$0xff]  ;;  %v1888_v48 = vld [vmem:[%s2282_s2 + $0x10] sm:$0xff]  }
  0x13   : > { %1732 = vmatprep.subr.bf16.mxu1 %v258_v4  ;;  %v265_v12 = vunpack.c.l.bf16 %v258_v4  ;;  %v266_v13 = vunpack.c.h.bf16 %v258_v4  ;;  %v1955_v14 = vpack.c.bf16 %v248_v11, %v247_v10  ;;  %v1887_v47 = vld [vmem:[%s2282_s2 + $0x8] sm:$0xff]   ;;  %v1889_v49 = vld [vmem:[%s2282_s2 + $0x18] sm:$0xff]   ;;  %v1890_v50 = vld [vmem:[%s2282_s2 + $0x20] sm:$0xff]  }
  0x14   : > { %1733 = vmatpush3.bf16.msra.mxu1 %v258_v4  ;;  %v263_v15 = vunpack.c.l.bf16 %v257_v8  ;;  %v264_v16 = vunpack.c.h.bf16 %v257_v8  ;;  %v261_v17 = vunpack.c.l.bf16 %v1953_v9  ;;  %v262_v18 = vunpack.c.h.bf16 %v1953_v9  ;;  %v1891_v51 = vld [vmem:[%s2282_s2 + $0x28] sm:$0xff]   ;;  %v1892_v52 = vld [vmem:[%s2282_s2 + $0x30] sm:$0xff]   ;;  %v1893_v53 = vld [vmem:[%s2282_s2 + $0x38] sm:$0xff]  }
  0x15   : > { %1734 = vmatprep.subr.bf16.mxu1 %v257_v8  ;;  %v273_v19 = vsub.f32 %v253_v1, %v265_v12  ;;  %v274_v20 = vsub.f32 %v254_v2, %v266_v13  ;;  %v259_v23 = vunpack.c.l.bf16 %v1955_v14  ;;  %v260_v27 = vunpack.c.h.bf16 %v1955_v14  ;;  %v1894_v54 = vld [vmem:[%s2282_s2 + $0x40] sm:$0xff]   ;;  %v1895_v55 = vld [vmem:[%s2282_s2 + $0x48] sm:$0xff]   ;;  %v2094_v58 = vld [vmem:[%s2283_s3 + $0x10] sm:$0xff]  }
  0x16   : > { %v271_v21 = vsub.f32 %v251_v3, %v263_v15  ;;  %v272_v22 = vsub.f32 %v252_v5, %v264_v16  ;;  %v269_v25 = vsub.f32 %v249_v6, %v261_v17  ;;  %v270_v26 = vsub.f32 %v250_v7, %v262_v18  ;;  %v2079_v56 = vld [vmem:[%s2283_s3] sm:$0xff]   ;;  %v2085_v57 = vld [vmem:[%s2283_s3 + $0x8] sm:$0xff]  }
  0x17   : > { %v278_v24 = vpack.c.bf16 %v274_v20, %v273_v19  ;;  %v267_v30 = vsub.f32 %v247_v10, %v259_v23  ;;  %v268_v31 = vsub.f32 %v248_v11, %v260_v27 }
  0x18   : > { %1735 = vmatpush3.bf16.msra.mxu1 %v257_v8  ;;  %v277_v28 = vpack.c.bf16 %v272_v22, %v271_v21  ;;  %v276_v29 = vpack.c.bf16 %v270_v26, %v269_v25 }
  0x19   : > { %1700 = vmatprep.subr.bf16.mxu0 %v278_v24  ;;  %1736 = vmatprep.subr.bf16.mxu1 %v1953_v9  ;;  %v275_v33 = vpack.c.bf16 %v268_v31, %v267_v30 }
  0x1a   : > { %1701 = vmatpush3.bf16.msra.mxu0 %v278_v24 }
  0x1b   : > { %1702 = vmatprep.subr.bf16.mxu0 %v277_v28 }
  0x1c   : > { %1737 = vmatpush3.bf16.msra.mxu1 %v1953_v9 }
  0x1d   : > { %1738 = vmatprep.subr.bf16.mxu1 %v1955_v14 }
  0x1e   : > { %1703 = vmatpush3.bf16.msra.mxu0 %v277_v28 }
  0x1f   : > { %1704 = vmatprep.subr.bf16.mxu0 %v276_v29 }
  0x20   : > { %1739 = vmatpush3.bf16.msra.mxu1 %v1955_v14 }
  0x21   : > { %1856 = vmatprep.subr.bf16.mxu1 %v258_v4 }
  0x22   : > { %1705 = vmatpush3.bf16.msra.mxu0 %v276_v29 }
  0x23   : > { %1741 = vmatmul.mubr.msk.bf16.vlgmr.msra.gmra.mxu1 %vm339_vm0, %v1873_v32  ;;  %1706 = vmatprep.subr.bf16.mxu0 %v275_v33 }
  0x24   : > { %1744 = vmatprep.mubr.msk.bf16.mxu1 %vm339_vm0, %v1874_v34  ;;  %1860 = vmatpush3.bf16.msra.mxu1 %v258_v4 }
  0x25   : > { %1857 = vmatprep.subr.bf16.mxu1 %v257_v8 }
  0x26   : > { %1707 = vmatpush3.bf16.msra.mxu0 %v275_v33 }
  0x27   : > { %1764 = vmatprep.subr.bf16.mxu0 %v258_v4 }
  0x28   : > { %1861 = vmatpush3.bf16.msra.mxu1 %v257_v8 }
  0x29   : > { %1709 = vmatmul.mubr.msk.bf16.vlgmr.msra.gmra.mxu0 %vm339_vm0, %v1873_v32  ;;  %1858 = vmatprep.subr.bf16.mxu1 %v1953_v9 }
  0x2a   : > { %1765 = vmatpush3.bf16.msra.mxu0 %v258_v4  ;;  %1712 = vmatprep.mubr.msk.bf16.mxu0 %vm339_vm0, %v1874_v34 }
  0x2b   : > { %1745 = vmatmul.mubr.msk.bf16.gmra.mxu1 %vm339_vm0, %v1875_v35  ;;  %1766 = vmatprep.subr.bf16.mxu0 %v257_v8 }
  0x2c   : > { %1748 = vmatprep.mubr.msk.bf16.mxu1 %vm339_vm0, %v1876_v36  ;;  %1862 = vmatpush3.bf16.msra.mxu1 %v1953_v9 }
  0x2d   : > { %1859 = vmatprep.subr.bf16.mxu1 %v1955_v14 }
  0x2e   : > { %1767 = vmatpush3.bf16.msra.mxu0 %v257_v8 }
  0x2f   : > { %1768 = vmatprep.subr.bf16.mxu0 %v1953_v9 }
  0x30   : > { %1863 = vmatpush3.bf16.msra.mxu1 %v1955_v14 }
  0x31   : > { %1713 = vmatmul.mubr.msk.bf16.gmra.mxu0 %vm339_vm0, %v1875_v35  ;;  %1796 = vmatprep.subr.bf16.mxu1 %v2079_v56 }
  0x32   : > { %1716 = vmatprep.mubr.msk.bf16.mxu0 %vm339_vm0, %v1876_v36  ;;  %1769 = vmatpush3.bf16.msra.mxu0 %v1953_v9 }
  0x33   : > { %1749 = vmatmul.mubr.msk.bf16.gmra.mxu1 %vm339_vm0, %v1877_v37  ;;  %1770 = vmatprep.subr.bf16.mxu0 %v1955_v14 }
  0x34   : > { %1752 = vmatprep.mubr.msk.bf16.mxu1 %vm339_vm0, %v1878_v38 }
  0x36   : > { %1771 = vmatpush3.bf16.msra.mxu0 %v1955_v14 }
  0x37   : > { %1826 = vmatprep.subr.bf16.mxu0 %v2085_v57 }
  0x39   : > { %1717 = vmatmul.mubr.msk.bf16.gmra.mxu0 %vm339_vm0, %v1877_v37 }
  0x3a   : > { %1720 = vmatprep.mubr.msk.bf16.mxu0 %vm339_vm0, %v1878_v38 }
  0x3b   : > { %1753 = vmatmul.mubr.msk.bf16.gmra.mxu1 %vm339_vm0, %v1879_v39 }
  0x3c   : > { %1756 = vmatprep.mubr.msk.bf16.mxu1 %vm339_vm0, %v1880_v40 }
  0x41   : > { %1721 = vmatmul.mubr.msk.bf16.gmra.mxu0 %vm339_vm0, %v1879_v39 }
  0x42   : > { %1724 = vmatprep.mubr.msk.bf16.mxu0 %vm339_vm0, %v1880_v40 }
  0x43   : > { %1757 = vmatmul.mubr.msk.bf16.gmra.mxu1 %vm339_vm0, %v1881_v41 }
  0x44   : > { %1760 = vmatprep.mubr.msk.bf16.mxu1 %vm339_vm0, %v1882_v42 }
  0x49   : > { %1725 = vmatmul.mubr.msk.bf16.gmra.mxu0 %vm339_vm0, %v1881_v41 }
  0x4a   : > { %1728 = vmatprep.mubr.msk.bf16.mxu0 %vm339_vm0, %v1882_v42 }
  0x4b   : > { %1761 = vmatmul.mubr.msk.bf16.gmra.mxu1 %vm339_vm0, %v1883_v43 }
  0x4c   : > { %1792 = vmatprep.mubr.msk.bf16.mxu1 %vm339_vm0, %v1884_v44 }
  0x51   : > { %1729 = vmatmul.mubr.msk.bf16.gmra.mxu0 %vm339_vm0, %v1883_v43 }
  0x52   : > { %1772 = vmatprep.mubr.msk.bf16.mxu0 %vm339_vm0, %v1886_v45 }
  0x53   : > { %1793 = vmatmul.mubr.msk.bf16.vlgmr.msra.gmra.mxu1 %vm339_vm0, %v1885_v46 }
  0x54   : > { %1797 = vmatpush3.bf16.msra.mxu1 %v2079_v56 }
  0x55   : > { %1806 = vmatprep.subr.bf16.mxu1 %v2079_v56 }
  0x59   : > { %1773 = vmatmul.mubr.msk.bf16.vlgmr.msra.gmra.mxu0 %vm339_vm0, %v1887_v47 }
  0x5a   : > { %1776 = vmatprep.mubr.msk.bf16.mxu0 %vm339_vm0, %v1888_v48  ;;  %1827 = vmatpush3.bf16.msra.mxu0 %v2085_v57 }
  0x5b   : > { %1846 = vmatprep.subr.bf16.mxu0 %v2094_v58 }
  0x61   : > { %1777 = vmatmul.mubr.msk.bf16.gmra.mxu0 %vm339_vm0, %v1889_v49 }
  0x62   : > { %1780 = vmatprep.mubr.msk.bf16.mxu0 %vm339_vm0, %v1890_v50 }
  0x69   : > { %1781 = vmatmul.mubr.msk.bf16.gmra.mxu0 %vm339_vm0, %v1891_v51 }
  0x6a   : > { %1784 = vmatprep.mubr.msk.bf16.mxu0 %vm339_vm0, %v1892_v52 }
  0x71   : > { %1785 = vmatmul.mubr.msk.bf16.gmra.mxu0 %vm339_vm0, %v1893_v53 }
  0x72   : > { %1788 = vmatprep.mubr.msk.bf16.mxu0 %vm339_vm0, %v1894_v54 }
  0x79   : > { %1789 = vmatmul.mubr.msk.bf16.gmra.mxu0 %vm339_vm0, %v1895_v55 }
  0xe3   : > { %v1742_v59 = vpop.f32.mrf.mxu1 }
  0xe5   : > { %v539_v60 = vpop.f32.mrf.mxu1 }
  0xe7   : > { %v1743_v61 = vpop.f32.mrf.mxu1 }
  0xe9   : > { %v1710_v62 = vpop.f32.mrf.mxu0  ;;  %v542_v63 = vpop.f32.mrf.mxu1 }
  0xea   : > { %v548_v40 = vadd.f32 %v1742_v59, %v1710_v62 }
  0xeb   : > { %v410_v0 = vpop.f32.mrf.mxu0  ;;  %v1746_v1 = vpop.f32.mrf.mxu1 }
  0xec   : > { %v540_v43 = vadd.f32 %v539_v60, %v410_v0 }
  0xed   : > { %v1711_v2 = vpop.f32.mrf.mxu0  ;;  %v555_v3 = vpop.f32.mrf.mxu1 }
  0xee   : > { %v551_v41 = vadd.f32 %v1743_v61, %v1711_v2 }
  0xef   : > { %v413_v4 = vpop.f32.mrf.mxu0  ;;  %v1747_v5 = vpop.f32.mrf.mxu1 }
  0xf0   : > { %v543_v44 = vadd.f32 %v542_v63, %v413_v4 }
  0xf1   : > { %v1714_v6 = vpop.f32.mrf.mxu0  ;;  %v558_v7 = vpop.f32.mrf.mxu1 }
  0xf2   : > { %v564_v60 = vadd.f32 %v1746_v1, %v1714_v6 }
  0xf3   : > { %v426_v8 = vpop.f32.mrf.mxu0  ;;  %v2097_v9 = vpop.f32.mrf.mxu1 }
  0xf4   : > { %v556_v2 = vadd.f32 %v555_v3, %v426_v8 }
  0xf5   : > { %v1715_v10 = vpop.f32.mrf.mxu0  ;;  %v2099_v11 = vpop.f32.mrf.mxu1 }
  0xf6   : > { %v567_v62 = vadd.f32 %v1747_v5, %v1715_v10 }
  0xf7   : > { %v429_v12 = vpop.f32.mrf.mxu0  ;;  %v2103_v14 = vpop.f32.mrf.mxu1 }
  0xf8   : > { %v559_v4 = vadd.f32 %v558_v7, %v429_v12 }
  0xf9   : > { %v2101_v13 = vpop.f32.mrf.mxu0  ;;  %v2109_v17 = vpop.f32.mrf.mxu1 }
  0xfb   : > { %v2105_v15 = vpop.f32.mrf.mxu0  ;;  %v2115_v20 = vpop.f32.mrf.mxu1 }
  0xfd   : > { %v2107_v16 = vpop.f32.mrf.mxu0  ;;  %v2121_v23 = vpop.f32.mrf.mxu1 }
  0xff   : > { %v2111_v18 = vpop.f32.mrf.mxu0  ;;  %v2127_v26 = vpop.f32.mrf.mxu1 }
 0x101   : > { %v2113_v19 = vpop.f32.mrf.mxu0  ;;  %v2133_v29 = vpop.f32.mrf.mxu1 }
 0x103   : > { %v2117_v21 = vpop.f32.mrf.mxu0  ;;  %v2139_v32 = vpop.f32.mrf.mxu1 }
 0x104   : > { %2286 = vst [vmem:[#allocation3_spill] sm:$0xff] %v2139_v32 }
 0x105   : > { %v2119_v22 = vpop.f32.mrf.mxu0  ;;  %v2145_v35 = vpop.f32.mrf.mxu1 }
 0x107   : > { %v2123_v24 = vpop.f32.mrf.mxu0  ;;  %v2149_v38 = vpop.f32.mrf.mxu1 }
 0x109   : > { %v2125_v25 = vpop.f32.mrf.mxu0  ;;  %v2151_v45 = vpop.f32.mrf.mxu1 }
 0x10b   : > { %v2129_v27 = vpop.f32.mrf.mxu0  ;;  %v2155_v53 = vpop.f32.mrf.mxu1 }
 0x10c   : > { %2288 = vst [vmem:[#allocation5_spill] sm:$0xff] %v2155_v53 }
 0x10d   : > { %v2131_v28 = vpop.f32.mrf.mxu0 }
 0x10f   : > { %v2135_v30 = vpop.f32.mrf.mxu0 }
 0x111   : > { %v2137_v31 = vpop.f32.mrf.mxu0 }
 0x112   : > { %2285 = vst [vmem:[#allocation2_spill] sm:$0xff] %v2137_v31 }
 0x113   : > { %v2141_v33 = vpop.f32.mrf.mxu0 }
 0x115   : > { %v2143_v34 = vpop.f32.mrf.mxu0 }
 0x116   : > { %2287 = vst [vmem:[#allocation4_spill] sm:$0xff] %v2143_v34 }
 0x117   : > { %v2147_v36 = vpop.f32.mrf.mxu0 }
 0x119   : > { %v1774_v37 = vpop.f32.mrf.mxu0 }
 0x11a   : > { %v861_v46 = vadd.f32 %v1774_v37, %v548_v40 }
 0x11b   : > { %v764_v39 = vpop.f32.mrf.mxu0 }
 0x11c   : > { %v859_v49 = vadd.f32 %v764_v39, %v540_v43 }
 0x11d   : > { %v1775_v42 = vpop.f32.mrf.mxu0 }
 0x11e   : > { %v862_v47 = vadd.f32 %v1775_v42, %v551_v41  ;;  %v2159_v41 = vpop.f32.mrf.mxu1 }
 0x11f   : > { %v767_v48 = vpop.f32.mrf.mxu0 }
 0x120   : > { %v860_v50 = vadd.f32 %v767_v48, %v543_v44  ;;  %v2153_v51 = vpack.c.bf16 %v862_v47, %v861_v46  ;;  %v2163_v3 = vpop.f32.mrf.mxu1 }
 0x121   : > { %v1778_v52 = vpop.f32.mrf.mxu0 }
 0x122   : > { %v883_v54 = vpack.c.bf16 %v860_v50, %v859_v49  ;;  %v897_v55 = vunpack.c.l.bf16 %v2153_v51  ;;  %v898_v59 = vunpack.c.h.bf16 %v2153_v51  ;;  %v865_v44 = vadd.f32 %v1778_v52, %v564_v60 }
 0x123   : > { %v780_v61 = vpop.f32.mrf.mxu0 }
 0x124   : > { %v895_v63 = vunpack.c.l.bf16 %v883_v54  ;;  %v896_v0 = vunpack.c.h.bf16 %v883_v54  ;;  %v921_v37 = vsub.f32 %v861_v46, %v897_v55  ;;  %v922_v39 = vsub.f32 %v862_v47, %v898_v59  ;;  %v622_v59 = vpop.f32.mrf.mxu1 }
 0x125   : > { %v1779_v40 = vpop.f32.mrf.mxu0  ;;  %v863_v34 = vadd.f32 %v780_v61, %v556_v2  ;;  %v572_v55 = vadd.f32 %v2099_v11, %v2105_v15 }
 0x126   : > { %v919_v42 = vsub.f32 %v859_v49, %v895_v63  ;;  %v920_v43 = vsub.f32 %v860_v50, %v896_v0  ;;  %v866_v48 = vadd.f32 %v1779_v40, %v567_v62  ;;  %v944_v5 = vpack.c.bf16 %v922_v39, %v921_v37  ;;  %v2183_v11 = vpop.f32.mrf.mxu1 }
 0x127   : > { %v783_v53 = vpop.f32.mrf.mxu0  ;;  %v583_v49 = vadd.f32 %v2103_v14, %v2107_v16  ;;  %v591_v39 = vadd.f32 %v2133_v29, %v2123_v24 }
 0x128   : > { %v943_v31 = vpack.c.bf16 %v920_v43, %v919_v42  ;;  %v2161_v32 = vpack.c.bf16 %v866_v48, %v865_v44  ;;  %v864_v1 = vadd.f32 %v783_v53, %v559_v4  ;;  %v844_v40 = vpop.f32.mrf.mxu1 }
 0x129   : > { %v1782_v6 = vpop.f32.mrf.mxu0 }
 0x12a   : > { %v901_v7 = vunpack.c.l.bf16 %v2161_v32  ;;  %v902_v8 = vunpack.c.h.bf16 %v2161_v32  ;;  %v885_v10 = vpack.c.bf16 %v864_v1, %v863_v34  ;;  %1798 = vmatprep.mubr.msk.bf16.mxu1 %vm963_vm1, %v943_v31  ;;  %v575_v31 = vadd.f32 %v2109_v17, %v2111_v18 }
 0x12b   : > { %v796_v12 = vpop.f32.mrf.mxu0  ;;  %1799 = vmatmul.mubr.msk.bf16.vlgmr.msra.gmra.mxu1 %vm963_vm1, %v944_v5 }
 0x12c   : > { %v899_v46 = vunpack.c.l.bf16 %v885_v10  ;;  %v900_v47 = vunpack.c.h.bf16 %v885_v10  ;;  %1807 = vmatpush3.bf16.msra.mxu1 %v2079_v56  ;;  %v925_v50 = vsub.f32 %v865_v44, %v901_v7  ;;  %v926_v52 = vsub.f32 %v866_v48, %v902_v8 }
 0x12d   : > { %v1783_v53 = vpop.f32.mrf.mxu0  ;;  %1816 = vmatprep.subr.bf16.mxu1 %v2085_v57  ;;  %v580_v56 = vadd.f32 %v2097_v9, %v2101_v13  ;;  %v867_v63 = vadd.f32 %v796_v12, %v572_v55  ;;  %v588_v13 = vadd.f32 %v2121_v23, %v2117_v21  ;;  %v1795_v23 = vpop.f32.mrf.mxu1  ;;  %v604_v8 = vadd.f32 %v2145_v35, %v2129_v27 }
 0x12e   : > { %v923_v61 = vsub.f32 %v863_v34, %v899_v46  ;;  %v924_v60 = vsub.f32 %v864_v1, %v900_v47  ;;  %v2179_v62 = vadd.f32 %v1783_v53, %v583_v49  ;;  %v946_v2 = vpack.c.bf16 %v926_v52, %v925_v50  ;;  %v2289_v46 = vld [vmem:[#allocation3_spill] sm:$0xff] }
 0x12f   : > { %v799_v14 = vpop.f32.mrf.mxu0  ;;  %v2181_v4 = vadd.f32 %v1782_v6, %v580_v56  ;;  %v599_v34 = vadd.f32 %v2127_v26, %v2119_v22  ;;  %v847_v12 = vpop.f32.mrf.mxu1  ;;  %v612_v47 = vadd.f32 %v2289_v46, %v2125_v25  ;;  %v2291_v56 = vld [vmem:[#allocation2_spill] sm:$0xff] }
 0x130   : > { %v945_v16 = vpack.c.bf16 %v924_v60, %v923_v61  ;;  %v868_v0 = vadd.f32 %v799_v14, %v575_v31  ;;  %v2292_v14 = vld [vmem:[#allocation5_spill] sm:$0xff] }
 0x131   : > { %v1786_v37 = vpop.f32.mrf.mxu0  ;;  %v888_v17 = vpack.c.bf16 %v2179_v62, %v2181_v4 }
 0x132   : > { %v887_v15 = vpack.c.bf16 %v868_v0, %v867_v63  ;;  %1802 = vmatprep.mubr.msk.bf16.mxu1 %vm963_vm1, %v945_v16  ;;  %v628_v16 = vadd.f32 %v2292_v14, %v2291_v56 }
 0x133   : > { %v812_v18 = vpop.f32.mrf.mxu0  ;;  %1803 = vmatmul.mubr.msk.bf16.gmra.mxu1 %vm963_vm1, %v946_v2  ;;  %v905_v35 = vunpack.c.l.bf16 %v888_v17  ;;  %v906_v53 = vunpack.c.h.bf16 %v888_v17 }
 0x134   : > { %1808 = vmatprep.mubr.msk.bf16.mxu1 %vm963_vm1, %v883_v54  ;;  %1828 = vmatprep.mubr.msk.bf16.mxu0 %vm963_vm1, %v887_v15  ;;  %v596_v54 = vadd.f32 %v2115_v20, %v2113_v19  ;;  %v871_v43 = vadd.f32 %v812_v18, %v588_v13  ;;  %v903_v1 = vunpack.c.l.bf16 %v887_v15  ;;  %v904_v5 = vunpack.c.h.bf16 %v887_v15 }
 0x135   : > { %v1787_v9 = vpop.f32.mrf.mxu0  ;;  %1829 = vmatmul.mubr.msk.bf16.vlgmr.msra.gmra.mxu0 %vm963_vm1, %v888_v17  ;;  %v623_v19 = vadd.f32 %v622_v59, %v2147_v36  ;;  %v929_v61 = vsub.f32 %v2181_v4, %v905_v35  ;;  %v930_v60 = vsub.f32 %v2179_v62, %v906_v53  ;;  %v881_v15 = vadd.f32 %v2183_v11, %v628_v16 }
 0x136   : > { %1847 = vmatpush3.bf16.msra.mxu0 %v2094_v58  ;;  %v2201_v44 = vadd.f32 %v1787_v9, %v599_v34  ;;  %v873_v6 = vadd.f32 %v1786_v37, %v596_v54  ;;  %v927_v20 = vsub.f32 %v867_v63, %v903_v1  ;;  %v928_v29 = vsub.f32 %v868_v0, %v904_v5 }
 0x137   : > { %v815_v42 = vpop.f32.mrf.mxu0  ;;  %v880_v27 = vadd.f32 %v847_v12, %v623_v19 }
 0x138   : > { %v872_v48 = vadd.f32 %v815_v42, %v591_v39  ;;  %v890_v24 = vpack.c.bf16 %v2201_v44, %v873_v6 }
 0x139   : > { %v1790_v21 = vpop.f32.mrf.mxu0 }
 0x13a   : > { %v889_v22 = vpack.c.bf16 %v872_v48, %v871_v43  ;;  %v909_v2 = vunpack.c.l.bf16 %v890_v24  ;;  %v910_v37 = vunpack.c.h.bf16 %v890_v24 }
 0x13b   : > { %v828_v26 = vpop.f32.mrf.mxu0  ;;  %1809 = vmatmul.mubr.msk.bf16.vlgmr.msra.gmra.mxu1 %vm963_vm1, %v2153_v51  ;;  %v615_v51 = vadd.f32 %v2149_v38, %v2131_v28  ;;  %v947_v28 = vpack.c.bf16 %v928_v29, %v927_v20 }
 0x13c   : > { %1812 = vmatprep.mubr.msk.bf16.mxu1 %vm963_vm1, %v885_v10  ;;  %1817 = vmatpush3.bf16.msra.mxu1 %v2085_v57  ;;  %v607_v10 = vadd.f32 %v2151_v45, %v2135_v30  ;;  %v620_v57 = vadd.f32 %v2159_v41, %v2141_v33  ;;  %v875_v49 = vadd.f32 %v828_v26, %v604_v8  ;;  %v907_v38 = vunpack.c.l.bf16 %v889_v22  ;;  %v2290_v33 = vld [vmem:[#allocation4_spill] sm:$0xff] }
 0x13d   : > { %1832 = vmatprep.mubr.msk.bf16.mxu0 %vm963_vm1, %v889_v22  ;;  %v1791_v7 = vpop.f32.mrf.mxu0  ;;  %1836 = vmatprep.subr.bf16.mxu1 %v2094_v58  ;;  %v908_v55 = vunpack.c.h.bf16 %v889_v22  ;;  %v877_v30 = vadd.f32 %v1790_v21, %v612_v47  ;;  %v631_v41 = vadd.f32 %v2163_v3, %v2290_v33  ;;  %v948_v3 = vpack.c.bf16 %v930_v60, %v929_v61 }
 0x13e   : > { %1833 = vmatmul.mubr.msk.bf16.gmra.mxu0 %vm963_vm1, %v890_v24  ;;  %v878_v50 = vadd.f32 %v1791_v7, %v615_v51  ;;  %v879_v31 = vadd.f32 %v844_v40, %v620_v57  ;;  %v931_v63 = vsub.f32 %v871_v43, %v907_v38  ;;  %v933_v9 = vsub.f32 %v873_v6, %v909_v2 }
 0x13f   : > { %v831_v36 = vpop.f32.mrf.mxu0  ;;  %v932_v0 = vsub.f32 %v872_v48, %v908_v55  ;;  %v934_v13 = vsub.f32 %v2201_v44, %v910_v37 }
 0x140   : > { %v876_v52 = vadd.f32 %v831_v36, %v607_v10  ;;  %v892_v59 = vpack.c.bf16 %v878_v50, %v877_v30  ;;  %v893_v25 = vpack.c.bf16 %v880_v27, %v879_v31 }
 0x141   : > { %v949_v17 = vpack.c.bf16 %v932_v0, %v931_v63  ;;  %v950_v40 = vpack.c.bf16 %v934_v13, %v933_v9 }
 0x142   : > { %v891_v45 = vpack.c.bf16 %v876_v52, %v875_v49  ;;  %v913_v42 = vunpack.c.l.bf16 %v892_v59  ;;  %v914_v11 = vunpack.c.h.bf16 %v892_v59  ;;  %v915_v54 = vunpack.c.l.bf16 %v893_v25 }
 0x143   : > { %1813 = vmatmul.mubr.msk.bf16.gmra.mxu1 %vm963_vm1, %v2161_v32  ;;  %v882_v32 = vadd.f32 %v1795_v23, %v631_v41  ;;  %v916_v43 = vunpack.c.h.bf16 %v893_v25 }
 0x144   : > { %1818 = vmatprep.mubr.msk.bf16.mxu1 %vm963_vm1, %v947_v28  ;;  %1848 = vmatprep.mubr.msk.bf16.mxu0 %vm963_vm1, %v891_v45  ;;  %v911_v18 = vunpack.c.l.bf16 %v891_v45  ;;  %v912_v4 = vunpack.c.h.bf16 %v891_v45  ;;  %v937_v1 = vsub.f32 %v877_v30, %v913_v42  ;;  %v938_v5 = vsub.f32 %v878_v50, %v914_v11 }
 0x145   : > { %v894_v62 = vpack.c.bf16 %v882_v32, %v881_v15  ;;  %v940_v21 = vsub.f32 %v880_v27, %v916_v43 }
 0x146   : > { %1849 = vmatmul.mubr.msk.bf16.vlgmr.msra.gmra.mxu0 %vm963_vm1, %v892_v59  ;;  %v935_v34 = vsub.f32 %v875_v49, %v911_v18  ;;  %v936_v39 = vsub.f32 %v876_v52, %v912_v4  ;;  %v952_v6 = vpack.c.bf16 %v938_v5, %v937_v1 }
 0x147   : > { %1852 = vmatprep.mubr.msk.bf16.mxu0 %vm963_vm1, %v893_v25  ;;  %v917_v23 = vunpack.c.l.bf16 %v894_v62  ;;  %v918_v44 = vunpack.c.h.bf16 %v894_v62 }
 0x148   : > { %v951_v48 = vpack.c.bf16 %v936_v39, %v935_v34 }
 0x149   : > { %v941_v26 = vsub.f32 %v881_v15, %v917_v23  ;;  %v942_v24 = vsub.f32 %v882_v32, %v918_v44 }
 0x14b   : > { %1819 = vmatmul.mubr.msk.bf16.vlgmr.msra.gmra.mxu1 %vm963_vm1, %v948_v3  ;;  %v954_v19 = vpack.c.bf16 %v942_v24, %v941_v26 }
 0x14c   : > { %1822 = vmatprep.mubr.msk.bf16.mxu1 %vm963_vm1, %v949_v17  ;;  %1837 = vmatpush3.bf16.msra.mxu1 %v2094_v58  ;;  %v939_v58 = vsub.f32 %v879_v31, %v915_v54 }
 0x14e   : > { %1853 = vmatmul.mubr.msk.bf16.gmra.mxu0 %vm963_vm1, %v894_v62  ;;  %v953_v22 = vpack.c.bf16 %v940_v21, %v939_v58 }
 0x153   : > { %1823 = vmatmul.mubr.msk.bf16.gmra.mxu1 %vm963_vm1, %v950_v40 }
 0x154   : > { %1838 = vmatprep.mubr.msk.bf16.mxu1 %vm963_vm1, %v951_v48 }
 0x15b   : > { %1839 = vmatmul.mubr.msk.bf16.vlgmr.msra.gmra.mxu1 %vm963_vm1, %v952_v6 }
 0x15c   : > { %1842 = vmatprep.mubr.msk.bf16.mxu1 %vm963_vm1, %v953_v22 }
 0x163   : > { %1843 = vmatmul.mubr.msk.bf16.gmra.mxu1 %vm963_vm1, %v954_v19 }
 0x1eb   : > { %v1800_v20 = vpop.f32.mrf.mxu1 }
 0x1ed   : > { %v1010_v29 = vpop.f32.mrf.mxu1 }
 0x1ef   : > { %v1801_v7 = vpop.f32.mrf.mxu1 }
 0x1f1   : > { %v1013_v8 = vpop.f32.mrf.mxu1 }
 0x1f3   : > { %v1804_v51 = vpop.f32.mrf.mxu1 }
 0x1f5   : > { %v2245_v10 = vpop.f32.mrf.mxu1  ;;  %v1830_v12 = vpop.f32.mrf.mxu0 }
 0x1f7   : > { %v2247_v57 = vpop.f32.mrf.mxu1  ;;  %v1249_v36 = vpop.f32.mrf.mxu0 }
 0x1f9   : > { %v2249_v46 = vpop.f32.mrf.mxu1  ;;  %v1831_v47 = vpop.f32.mrf.mxu0 }
 0x1fb   : > { %v1810_v49 = vpop.f32.mrf.mxu1  ;;  %v1252_v50 = vpop.f32.mrf.mxu0 }
 0x1fc   : > { %v1096_v37 = vadd.f32 %v1810_v49, %v1800_v20 }
 0x1fd   : > { %v1087_v52 = vpop.f32.mrf.mxu1 }
 0x1fe   : > { %v1834_v27 = vpop.f32.mrf.mxu0  ;;  %v1088_v18 = vadd.f32 %v1087_v52, %v1010_v29 }
 0x1ff   : > { %v1811_v35 = vpop.f32.mrf.mxu1 }
 0x200   : > { %v1265_v53 = vpop.f32.mrf.mxu0  ;;  %v1099_v13 = vadd.f32 %v1811_v35, %v1801_v7 }
 0x201   : > { %v1090_v28 = vpop.f32.mrf.mxu1 }
 0x202   : > { %v1835_v55 = vpop.f32.mrf.mxu0  ;;  %v1091_v43 = vadd.f32 %v1090_v28, %v1013_v8 }
 0x203   : > { %v1814_v38 = vpop.f32.mrf.mxu1 }
 0x204   : > { %v1268_v31 = vpop.f32.mrf.mxu0  ;;  %v1112_v23 = vadd.f32 %v1814_v38, %v1804_v51 }
 0x205   : > { %v1103_v30 = vpop.f32.mrf.mxu1 }
 0x206   : > { %v1850_v59 = vpop.f32.mrf.mxu0  ;;  %v1104_v20 = vadd.f32 %v1103_v30, %v2245_v10 }
 0x207   : > { %v1815_v45 = vpop.f32.mrf.mxu1 }
 0x208   : > { %v1419_v60 = vpop.f32.mrf.mxu0  ;;  %v1115_v51 = vadd.f32 %v1815_v45, %v2247_v57 }
 0x209   : > { %v1106_v33 = vpop.f32.mrf.mxu1 }
 0x20a   : > { %v1851_v16 = vpop.f32.mrf.mxu0 }
 0x20b   : > { %v1820_v41 = vpop.f32.mrf.mxu1 }
 0x20c   : > { %v1258_v32 = vadd.f32 %v1830_v12, %v1820_v41  ;;  %v1422_v3 = vpop.f32.mrf.mxu0 }
 0x20d   : > { %v1172_v25 = vpop.f32.mrf.mxu1 }
 0x20e   : > { %v1250_v15 = vadd.f32 %v1249_v36, %v1172_v25  ;;  %v1282_v4 = vadd.f32 %v1258_v32, %v1096_v37  ;;  %v1854_v34 = vpop.f32.mrf.mxu0 }
 0x20f   : > { %v1821_v61 = vpop.f32.mrf.mxu1 }
 0x210   : > { %v1261_v62 = vadd.f32 %v1831_v47, %v1821_v61  ;;  %v1280_v40 = vadd.f32 %v1250_v15, %v1088_v18  ;;  %v1435_v44 = vpop.f32.mrf.mxu0 }
 0x211   : > { %v1175_v56 = vpop.f32.mrf.mxu1 }
 0x212   : > { %v1253_v42 = vadd.f32 %v1252_v50, %v1175_v56  ;;  %v1283_v1 = vadd.f32 %v1261_v62, %v1099_v13  ;;  %v1855_v47 = vpop.f32.mrf.mxu0 }
 0x213   : > { %v1824_v14 = vpop.f32.mrf.mxu1 }
 0x214   : > { %v1274_v5 = vadd.f32 %v1834_v27, %v1824_v14  ;;  %v1281_v22 = vadd.f32 %v1253_v42, %v1091_v43  ;;  %v1438_v57 = vpop.f32.mrf.mxu0 }
 0x215   : > { %v1188_v63 = vpop.f32.mrf.mxu1 }
 0x216   : > { %v1266_v26 = vadd.f32 %v1265_v53, %v1188_v63  ;;  %v1286_v7 = vadd.f32 %v1274_v5, %v1112_v23  ;;  %v1107_v53 = vadd.f32 %v1106_v33, %v2249_v46 }
 0x217   : > { %v1825_v0 = vpop.f32.mrf.mxu1 }
 0x218   : > { %v1277_v8 = vadd.f32 %v1835_v55, %v1825_v0  ;;  %v1284_v50 = vadd.f32 %v1266_v26, %v1104_v20 }
 0x219   : > { %v1191_v2 = vpop.f32.mrf.mxu1 }
 0x21a   : > { %v1269_v52 = vadd.f32 %v1268_v31, %v1191_v2  ;;  %v1287_v28 = vadd.f32 %v1277_v8, %v1115_v51 }
 0x21b   : > { %v1840_v17 = vpop.f32.mrf.mxu1 }
 0x21c   : > { %v1428_v9 = vadd.f32 %v1850_v59, %v1840_v17  ;;  %v1285_v45 = vadd.f32 %v1269_v52, %v1107_v53 }
 0x21d   : > { %v1342_v39 = vpop.f32.mrf.mxu1 }
 0x21e   : > { %v1452_v11 = vadd.f32 %v1428_v9, %v1282_v4  ;;  %v1420_v54 = vadd.f32 %v1419_v60, %v1342_v39 }
 0x21f   : > { %v1841_v48 = vpop.f32.mrf.mxu1 }
 0x220   : > { %1461 = vst.msk [vmem:[%s2256_s5 + $0x10] sm:$0xff] %vm1458_vm2, %v1452_v11  ;;  %v1450_v58 = vadd.f32 %v1420_v54, %v1280_v40  ;;  %v1431_v21 = vadd.f32 %v1851_v16, %v1841_v48 }
 0x221   : > { %v1345_v6 = vpop.f32.mrf.mxu1 }
 0x222   : > { %1459 = vst.msk [vmem:[%s2256_s5] sm:$0xff] %vm1458_vm2, %v1450_v58  ;;  %v1453_v24 = vadd.f32 %v1431_v21, %v1283_v1  ;;  %v1423_v19 = vadd.f32 %v1422_v3, %v1345_v6 }
 0x223   : > { %v1844_v29 = vpop.f32.mrf.mxu1 }
 0x224   : > { %1462 = vst.msk [vmem:[%s2256_s5 + $0x18] sm:$0xff] %vm1458_vm2, %v1453_v24  ;;  %v1451_v12 = vadd.f32 %v1423_v19, %v1281_v22  ;;  %v1444_v36 = vadd.f32 %v1854_v34, %v1844_v29 }
 0x225   : > { %v1358_v49 = vpop.f32.mrf.mxu1 }
 0x226   : > { %1460 = vst.msk [vmem:[%s2256_s5 + $0x8] sm:$0xff] %vm1458_vm2, %v1451_v12  ;;  %v1456_v27 = vadd.f32 %v1444_v36, %v1286_v7  ;;  %v1436_v10 = vadd.f32 %v1435_v44, %v1358_v49 }
 0x227   : > { %v1845_v35 = vpop.f32.mrf.mxu1 }
 0x228   : > { %1465 = vst.msk [vmem:[%s2256_s5 + $0x30] sm:$0xff] %vm1458_vm2, %v1456_v27  ;;  %v1454_v38 = vadd.f32 %v1436_v10, %v1284_v50  ;;  %v1447_v55 = vadd.f32 %v1855_v47, %v1845_v35 }
 0x229   : > { %v1361_v30 = vpop.f32.mrf.mxu1 }
 0x22a   : > { %1463 = vst.msk [vmem:[%s2256_s5 + $0x20] sm:$0xff] %vm1458_vm2, %v1454_v38  ;;  %v1457_v31 = vadd.f32 %v1447_v55, %v1287_v28  ;;  %v1439_v41 = vadd.f32 %v1438_v57, %v1361_v30 }
 0x22c   : > { %1466 = vst.msk [vmem:[%s2256_s5 + $0x38] sm:$0xff] %vm1458_vm2, %v1457_v31  ;;  %v1455_v59 = vadd.f32 %v1439_v41, %v1285_v45 }
 0x22e   : > { %1464 = vst.msk [vmem:[%s2256_s5 + $0x28] sm:$0xff] %vm1458_vm2, %v1455_v59 }
 0x22f PF: > { %s14_s15 = sadd.s32 1, %s1905_s15  }
 0x230   : > { %p11_p4 = scmp.ge.s32.totalorder %s14_s15, 4  }
 0x232   :  { %13 = sbr.rel (!%p11_p4) target bundleno = 1 (0x1), region = 66 }

</bundles_post_ra>
